<compile_context>
chip_gen: v6e
topology: v6e:2x2x1
jax: 0.10.0
libtpu: 0.0.40
codegen_flags: <defaults>
</compile_context>

<pallas_src>
import functools

import jax
import jax.numpy as jnp
from jax.experimental import pallas as pl
from jax.experimental.pallas import tpu as pltpu

LANE = 128


def _round_up(x, m):
    return ((x + m - 1) // m) * m


def nn_kernel(x_ref, w1_ref, b1_ref, w2_ref, b2_ref, o_ref):
    # One batch tile:  o = relu(relu(x @ W1 + b1) @ W2 + b2)
    # Hidden dim is pre-padded to 128 lanes so the intermediate is lane-dense;
    # the output keeps its real (tiny) width so HBM writeback is minimal
    # (masked vst on 4 columns, but 32x less write traffic than a padded slab).
    x = x_ref[...]
    h = jnp.dot(x, w1_ref[...], preferred_element_type=jnp.float32)
    h = jnp.maximum(h + b1_ref[...], 0.0)
    y = jnp.dot(h, w2_ref[...], preferred_element_type=jnp.float32)
    y = jnp.maximum(y + b2_ref[...], 0.0)
    o_ref[...] = y.astype(o_ref.dtype)


def pad_params(w1, b1, w2, b2, dtype=jnp.float32):
    """One-time (init-time) padding of the hidden dim to 128 lanes.

    Padded hidden units get zero weight + zero bias -> relu(0) = 0, and their
    rows of W2 are zero, so they contribute nothing.  The output/action dim is
    NOT padded.
    """
    k, hidden = w1.shape
    action = w2.shape[1]
    hpad = _round_up(hidden, LANE)
    w1p = jnp.zeros((k, hpad), dtype).at[:, :hidden].set(w1.astype(dtype))
    b1p = jnp.zeros((1, hpad), dtype).at[:, :hidden].set(b1.reshape(1, -1).astype(dtype))
    w2p = jnp.zeros((hpad, action), dtype).at[:hidden, :].set(w2.astype(dtype))
    b2p = b2.reshape(1, action).astype(dtype)
    return w1p, b1p, w2p, b2p


@functools.partial(jax.jit, static_argnames=("block_batch",))
def nn_forward(x, w1p, b1p, w2p, b2p, *, block_batch=1024):
    """relu(relu(x @ W1 + b1) @ W2 + b2) in one fused pallas_call.

    x   : (batch, windowsize)
    w1p : (windowsize, hpad)   b1p: (1, hpad)     (hpad = hidden padded to 128)
    w2p : (hpad, action)       b2p: (1, action)
    """
    batch, k = x.shape
    hpad = w1p.shape[1]
    action = w2p.shape[1]

    # Batch tile: multiple of 8 (f32 sublane rule); capped at half the batch
    # (rounded up to 8) so the "parallel" grid axis exposes >= 2 independent
    # tiles for v7x's two TensorCores whenever batch permits.
    tb = _round_up(min(block_batch, batch), 8)
    if batch >= 16:
        tb = min(tb, _round_up(pl.cdiv(batch, 2), 8))
    tb = max(tb, 8)

    pbatch = _round_up(batch, tb)
    # Only pad x when the last tile is ragged (extra HBM copy otherwise).
    xp = x if pbatch == batch else jnp.pad(x, ((0, pbatch - batch), (0, 0)))
    grid = (pbatch // tb,)

    itemsize = jnp.dtype(x.dtype).itemsize
    flops = 2 * pbatch * (k * hpad + hpad * action)
    bytes_accessed = itemsize * (
        pbatch * k            # x read
        + pbatch * action     # unpadded output write
        + k * hpad + hpad     # W1 + b1 (read once, resident)
        + hpad * action + action  # W2 + b2 (read once, resident)
    )

    out = pl.pallas_call(
        nn_kernel,
        out_shape=jax.ShapeDtypeStruct((pbatch, action), x.dtype),
        grid=grid,
        in_specs=[
            pl.BlockSpec((tb, k), lambda i: (i, 0)),         # x: batch-tiled
            pl.BlockSpec((k, hpad), lambda i: (0, 0)),       # W1: resident
            pl.BlockSpec((1, hpad), lambda i: (0, 0)),       # b1: resident
            pl.BlockSpec((hpad, action), lambda i: (0, 0)),  # W2: resident
            pl.BlockSpec((1, action), lambda i: (0, 0)),     # b2: resident
        ],
        out_specs=pl.BlockSpec((tb, action), lambda i: (i, 0)),
        compiler_params=pltpu.CompilerParams(
            # Independent batch tiles -> shardable across v7x's 2 TensorCores.
            dimension_semantics=("parallel",),
        ),
        cost_estimate=pl.CostEstimate(
            flops=flops, transcendentals=0, bytes_accessed=bytes_accessed
        ),
    )(xp, w1p, b1p, w2p, b2p)

    return out if pbatch == batch else out[:batch]


if __name__ == "__main__":
    windowsize = 32
    hidden = 10
    action_size = 4
    batch = 256        # tb = 128 -> grid = (2,): exercises tiling + megacore path

    key = jax.random.PRNGKey(0)
    kx, k1, k2, k3, k4 = jax.random.split(key, 5)
    x = jax.random.normal(kx, (batch, windowsize), jnp.float32)

    # Deterministic init mirroring nn.Linear's U(-1/sqrt(fan_in), 1/sqrt(fan_in)).
    bound1 = 1.0 / jnp.sqrt(jnp.float32(windowsize))
    bound2 = 1.0 / jnp.sqrt(jnp.float32(hidden))
    w1 = jax.random.uniform(k1, (windowsize, hidden), jnp.float32, -bound1, bound1)
    b1 = jax.random.uniform(k2, (hidden,), jnp.float32, -bound1, bound1)
    w2 = jax.random.uniform(k3, (hidden, action_size), jnp.float32, -bound2, bound2)
    b2 = jax.random.uniform(k4, (action_size,), jnp.float32, -bound2, bound2)

    # One-time padding of parameters (outside the jitted hot path).
    w1p, b1p, w2p, b2p = pad_params(w1, b1, w2, b2)

    out = nn_forward(x, w1p, b1p, w2p, b2p)
    jax.block_until_ready(out)

    # Reference check in plain JAX.
    ref = jnp.maximum(jnp.maximum(x @ w1 + b1, 0.0) @ w2 + b2, 0.0)
    assert out.shape == (batch, action_size)
    assert jnp.allclose(out, ref, atol=1e-5, rtol=1e-5)

    print("KERNEL_OK")
</pallas_src>

<mosaic_0001>
module attributes {stable_mosaic.version = 11 : i64} {
  func.func @nn_kernel(%arg0: i32, %arg1: memref<128x32xf32, #tpu.memory_space<vmem>>, %arg2: memref<32x128xf32, #tpu.memory_space<vmem>>, %arg3: memref<1x128xf32, #tpu.memory_space<vmem>>, %arg4: memref<128x4xf32, #tpu.memory_space<vmem>>, %arg5: memref<1x4xf32, #tpu.memory_space<vmem>>, %arg6: memref<128x4xf32, #tpu.memory_space<vmem>>) attributes {dimension_semantics = [#tpu.dimension_semantics<parallel>], iteration_bounds = array<i64: 2>, scalar_prefetch = 0 : i64, scratch_operands = 0 : i64, tpu.core_type = #tpu.core_type<tc>, window_params = [{transform_indices = @transform_0, window_bounds = array<i64: 128, 32>}, {pipeline_mode = #tpu.pipeline_mode<synchronous>, transform_indices = @transform_1, window_bounds = array<i64: 32, 128>}, {pipeline_mode = #tpu.pipeline_mode<synchronous>, transform_indices = @transform_2, window_bounds = array<i64: 1, 128>}, {pipeline_mode = #tpu.pipeline_mode<synchronous>, transform_indices = @transform_3, window_bounds = array<i64: 128, 4>}, {pipeline_mode = #tpu.pipeline_mode<synchronous>, transform_indices = @transform_4, window_bounds = array<i64: 1, 4>}, {transform_indices = @transform_5, window_bounds = array<i64: 128, 4>}]} {
    %c0 = arith.constant 0 : index
    %c0_0 = arith.constant 0 : index
    %0 = vector.load %arg1[%c0, %c0_0] : memref<128x32xf32, #tpu.memory_space<vmem>>, vector<128x32xf32>
    %c0_1 = arith.constant 0 : index
    %c0_2 = arith.constant 0 : index
    %1 = vector.load %arg2[%c0_1, %c0_2] : memref<32x128xf32, #tpu.memory_space<vmem>>, vector<32x128xf32>
    %cst = arith.constant dense<0.000000e+00> : vector<128x128xf32>
    %2 = tpu.matmul %0, %1, %cst {dimension_numbers = #tpu.dot_dimension_numbers<[1], [0], [0], [1], [0, 0, 1, 1], [], []>} : vector<128x32xf32>, vector<32x128xf32>, vector<128x128xf32> -> vector<128x128xf32>
    %c0_3 = arith.constant 0 : index
    %c0_4 = arith.constant 0 : index
    %3 = vector.load %arg3[%c0_3, %c0_4] : memref<1x128xf32, #tpu.memory_space<vmem>>, vector<1x128xf32>
    %4 = vector.broadcast %3 : vector<1x128xf32> to vector<128x128xf32>
    %5 = arith.addf %2, %4 : vector<128x128xf32>
    %cst_5 = arith.constant 0.000000e+00 : f32
    %6 = vector.broadcast %cst_5 : f32 to vector<128x128xf32>
    %7 = arith.maximumf %5, %6 : vector<128x128xf32>
    %c0_6 = arith.constant 0 : index
    %c0_7 = arith.constant 0 : index
    %8 = vector.load %arg4[%c0_6, %c0_7] : memref<128x4xf32, #tpu.memory_space<vmem>>, vector<128x4xf32>
    %cst_8 = arith.constant dense<0.000000e+00> : vector<128x4xf32>
    %9 = tpu.matmul %7, %8, %cst_8 {dimension_numbers = #tpu.dot_dimension_numbers<[1], [0], [0], [1], [0, 0, 1, 1], [], []>} : vector<128x128xf32>, vector<128x4xf32>, vector<128x4xf32> -> vector<128x4xf32>
    %c0_9 = arith.constant 0 : index
    %c0_10 = arith.constant 0 : index
    %10 = vector.load %arg5[%c0_9, %c0_10] : memref<1x4xf32, #tpu.memory_space<vmem>>, vector<1x4xf32>
    %11 = vector.broadcast %10 : vector<1x4xf32> to vector<128x4xf32>
    %12 = arith.addf %9, %11 : vector<128x4xf32>
    %cst_11 = arith.constant 0.000000e+00 : f32
    %13 = vector.broadcast %cst_11 : f32 to vector<128x4xf32>
    %14 = arith.maximumf %12, %13 : vector<128x4xf32>
    %c0_12 = arith.constant 0 : index
    %c0_13 = arith.constant 0 : index
    %15 = vector.load %arg6[%c0_12, %c0_13] : memref<128x4xf32, #tpu.memory_space<vmem>>, vector<128x4xf32>
    tpu.vector_store %arg6[%c0_12, %c0_13], %14 {strides = array<i32>} : memref<128x4xf32, #tpu.memory_space<vmem>>, vector<128x4xf32>,
    return
  }
  func.func @transform_0(%arg0: i32) -> (i32, i32) {
    %c0_i32 = arith.constant 0 : i32
    %c0_i32_0 = arith.constant 0 : i32
    return %arg0, %c0_i32 : i32, i32
  }
  func.func @transform_1(%arg0: i32) -> (i32, i32) {
    %c0_i32 = arith.constant 0 : i32
    %c0_i32_0 = arith.constant 0 : i32
    %c0_i32_1 = arith.constant 0 : i32
    return %c0_i32, %c0_i32_0 : i32, i32
  }
  func.func @transform_2(%arg0: i32) -> (i32, i32) {
    %c0_i32 = arith.constant 0 : i32
    %c0_i32_0 = arith.constant 0 : i32
    %c0_i32_1 = arith.constant 0 : i32
    return %c0_i32, %c0_i32_0 : i32, i32
  }
  func.func @transform_3(%arg0: i32) -> (i32, i32) {
    %c0_i32 = arith.constant 0 : i32
    %c0_i32_0 = arith.constant 0 : i32
    %c0_i32_1 = arith.constant 0 : i32
    return %c0_i32, %c0_i32_0 : i32, i32
  }
  func.func @transform_4(%arg0: i32) -> (i32, i32) {
    %c0_i32 = arith.constant 0 : i32
    %c0_i32_0 = arith.constant 0 : i32
    %c0_i32_1 = arith.constant 0 : i32
    return %c0_i32, %c0_i32_0 : i32, i32
  }
  func.func @transform_5(%arg0: i32) -> (i32, i32) {
    %c0_i32 = arith.constant 0 : i32
    %c0_i32_0 = arith.constant 0 : i32
    return %arg0, %c0_i32 : i32, i32
  }
}

</mosaic_0001>

<bundles_post_ra>
// kernel: nn_forward.1
= control target key start
LH: loop header
LB: loop body
LE: loop exit
PB: predicated region body
PF: predicated region fallthrough
CT: control target
= control target key end

     0   :  { %s969_s18 = smov 0   ;;  %s1145_s0 = inlined_call_operand.vmem [shape: f32[256,32], index: 0, kind: input, shape index: {}]   ;;  %s1146_s1 = inlined_call_operand.vmem [shape: f32[32,128], index: 1, kind: input, shape index: {}]   ;;  %s1147_s2 = inlined_call_operand.vmem [shape: f32[1,128], index: 2, kind: input, shape index: {}]   ;;  %s1148_s3 = inlined_call_operand.vmem [shape: f32[128,4], index: 3, kind: input, shape index: {}]   ;;  %s1149_s4 = inlined_call_operand.vmem [shape: f32[1,4], index: 4, kind: input, shape index: {}]   ;;  %s1150_s5 = inlined_call_operand.vmem [shape: f32[256,4], index: 5, kind: output, shape index: {}]  }
   0x1 LB: > { %s722_s19 = sadd.s32 4294967295, %s937_s18   ;;  %p726_p0 = scmp.ge.s32.totalorder %s937_s18, 1  ;;  %s937_s18 = sphi %s969_s18, %s15_s18  }
   0x2   : > { %p188_p1 = scmp.lt.s32.totalorder %s937_s18, 3 }
   0x4   : > { %p189_p2 = pnand %p726_p0, %p188_p1 }
   0x5   : > { %s727_s24 = sshll.u32 (!%p189_p2), %s722_s19, 4 }
   0x6   : > { %192 = sbr.rel (%p189_p2) target bundleno = 448 (0x1c0), region = 40  ;;  %p217_p3 = scmp.lt.s32.totalorder (!%p189_p2), %s727_s24, 31 }
   0xb   : > { %v247_v0 = vld [vmem:[%s1146_s1 + $0x18] sm:$0xff]  ;;  %v246_v1 = vld [vmem:[%s1146_s1 + $0x10] sm:$0xff]  ;;  %v245_v3 = vld [vmem:[%s1146_s1 + $0x8] sm:$0xff]  ;;  %s1152_s24 = smov (!%p217_p3, %s727_s24), 31  ;;  %vm255_vm0 = vcmask 261120   ;;  %vm649_vm1 = vcmask 31744  }
   0xc   : > { %803 = vmatprep.subr.mxu0 %v247_v0  ;;  %v480_v2 = vld [vmem:[%s1148_s3 + $0x78] sm:$0xff]  ;;  %v479_v4 = vld [vmem:[%s1148_s3 + $0x70] sm:$0xff]  ;;  %v244_v5 = vld [vmem:[%s1146_s1] sm:$0xff]  ;;  %s728_s8 = sshll.u32 %s1152_s24, 3 }
   0xd   : > { %804 = vmatpush3.msra.mxu0 %v247_v0  ;;  %891 = vmatprep.subr.mxu1 %v480_v2  ;;  %v478_v6 = vld [vmem:[%s1148_s3 + $0x68] sm:$0xff]  ;;  %s1006_s13 = scalar_lea.vmem %s1145_s0, %s728_s8  ;;  %v477_v11 = vld [vmem:[%s1148_s3 + $0x60] sm:$0xff]  ;;  %v476_v14 = vld [vmem:[%s1148_s3 + $0x58] sm:$0xff]  ;;  %s1093_s26 = scalar_lea.vmem %s1150_s5, %s728_s8 }
   0xe   : > { %805 = vmatprep.subr.mxu0 %v246_v1  ;;  %907 = vmatpush3.msra.mxu1 %v480_v2  ;;  %v228_v7 = vld [vmem:[%s1006_s13] sm:$0xff]  ;;  %v229_v8 = vld [vmem:[%s1006_s13 + $0x8] sm:$0xff]  ;;  %v230_v9 = vld [vmem:[%s1006_s13 + $0x10] sm:$0xff] }
   0xf   : > { %806 = vmatpush3.msra.mxu0 %v246_v1  ;;  %892 = vmatprep.subr.mxu1 %v479_v4  ;;  %v231_v10 = vld [vmem:[%s1006_s13 + $0x18] sm:$0xff]  ;;  %v232_v12 = vld [vmem:[%s1006_s13 + $0x20] sm:$0xff]  ;;  %v233_v13 = vld [vmem:[%s1006_s13 + $0x28] sm:$0xff] }
  0x10   : > { %807 = vmatprep.subr.mxu0 %v245_v3  ;;  %908 = vmatpush3.msra.mxu1 %v479_v4  ;;  %v234_v15 = vld [vmem:[%s1006_s13 + $0x30] sm:$0xff]  ;;  %v235_v17 = vld [vmem:[%s1006_s13 + $0x38] sm:$0xff]  ;;  %v474_v18 = vld [vmem:[%s1148_s3 + $0x48] sm:$0xff] }
  0x11   : > { %808 = vmatpush3.msra.mxu0 %v245_v3  ;;  %893 = vmatprep.subr.mxu1 %v478_v6  ;;  %v475_v16 = vld [vmem:[%s1148_s3 + $0x50] sm:$0xff]  ;;  %v236_v19 = vld [vmem:[%s1006_s13 + $0x40] sm:$0xff]  ;;  %v237_v21 = vld [vmem:[%s1006_s13 + $0x48] sm:$0xff] }
  0x12   : > { %809 = vmatprep.subr.mxu0 %v244_v5  ;;  %909 = vmatpush3.msra.mxu1 %v478_v6  ;;  %v473_v20 = vld [vmem:[%s1148_s3 + $0x40] sm:$0xff]  ;;  %v472_v22 = vld [vmem:[%s1148_s3 + $0x38] sm:$0xff]  ;;  %v238_v23 = vld [vmem:[%s1006_s13 + $0x50] sm:$0xff] }
  0x13   : > { %810 = vmatpush3.msra.mxu0 %v244_v5  ;;  %811 = vmatprep.mubr.msk.f32.mxu0 %vm255_vm0, %v228_v7  ;;  %v471_v24 = vld [vmem:[%s1148_s3 + $0x30] sm:$0xff]  ;;  %v239_v25 = vld [vmem:[%s1006_s13 + $0x58] sm:$0xff]  ;;  %v470_v26 = vld [vmem:[%s1148_s3 + $0x28] sm:$0xff] }
  0x14   : > { %812 = vmatmul.mubr.msk.f32.vlgmr.msra.gmra.mxu0 %vm255_vm0, %v229_v8  ;;  %835 = vmatprep.subr.mxu0 %v480_v2  ;;  %v240_v27 = vld [vmem:[%s1006_s13 + $0x60] sm:$0xff]  ;;  %v241_v29 = vld [vmem:[%s1006_s13 + $0x68] sm:$0xff]  ;;  %v242_v30 = vld [vmem:[%s1006_s13 + $0x70] sm:$0xff] }
  0x15   : > { %814 = vmatprep.mubr.msk.f32.mxu0 %vm255_vm0, %v230_v9  ;;  %836 = vmatpush3.msra.mxu0 %v480_v2  ;;  %v469_v28 = vld [vmem:[%s1148_s3 + $0x20] sm:$0xff]  ;;  %v243_v31 = vld [vmem:[%s1006_s13 + $0x78] sm:$0xff]  ;;  %v467_v33 = vld [vmem:[%s1148_s3 + $0x10] sm:$0xff] }
  0x16   : > { %837 = vmatprep.subr.mxu0 %v479_v4  ;;  %894 = vmatprep.subr.mxu1 %v477_v11  ;;  %v468_v32 = vld [vmem:[%s1148_s3 + $0x18] sm:$0xff]  ;;  %v466_v34 = vld [vmem:[%s1148_s3 + $0x8] sm:$0xff]  ;;  %v465_v35 = vld [vmem:[%s1148_s3] sm:$0xff] }
  0x17   : > { %838 = vmatpush3.msra.mxu0 %v479_v4  ;;  %910 = vmatpush3.msra.mxu1 %v477_v11  ;;  %v731_v36 = vld [vmem:[%s1147_s2] ss:$0 sm:$0xff] }
  0x18   : > { %815 = vmatmul.mubr.msk.f32.gmra.mxu0 %vm255_vm0, %v231_v10  ;;  %839 = vmatprep.subr.mxu0 %v478_v6 }
  0x19   : > { %817 = vmatprep.mubr.msk.f32.mxu0 %vm255_vm0, %v232_v12  ;;  %840 = vmatpush3.msra.mxu0 %v478_v6 }
  0x1a   : > { %841 = vmatprep.subr.mxu0 %v477_v11  ;;  %895 = vmatprep.subr.mxu1 %v476_v14 }
  0x1b   : > { %842 = vmatpush3.msra.mxu0 %v477_v11  ;;  %911 = vmatpush3.msra.mxu1 %v476_v14 }
  0x1c   : > { %818 = vmatmul.mubr.msk.f32.gmra.mxu0 %vm255_vm0, %v233_v13  ;;  %843 = vmatprep.subr.mxu0 %v476_v14 }
  0x1d   : > { %820 = vmatprep.mubr.msk.f32.mxu0 %vm255_vm0, %v234_v15  ;;  %844 = vmatpush3.msra.mxu0 %v476_v14 }
  0x1e   : > { %845 = vmatprep.subr.mxu0 %v475_v16  ;;  %896 = vmatprep.subr.mxu1 %v475_v16 }
  0x1f   : > { %846 = vmatpush3.msra.mxu0 %v475_v16  ;;  %912 = vmatpush3.msra.mxu1 %v475_v16 }
  0x20   : > { %821 = vmatmul.mubr.msk.f32.gmra.mxu0 %vm255_vm0, %v235_v17  ;;  %847 = vmatprep.subr.mxu0 %v474_v18 }
  0x21   : > { %823 = vmatprep.mubr.msk.f32.mxu0 %vm255_vm0, %v236_v19  ;;  %848 = vmatpush3.msra.mxu0 %v474_v18 }
  0x22   : > { %849 = vmatprep.subr.mxu0 %v473_v20  ;;  %897 = vmatprep.subr.mxu1 %v474_v18 }
  0x23   : > { %850 = vmatpush3.msra.mxu0 %v473_v20  ;;  %913 = vmatpush3.msra.mxu1 %v474_v18 }
  0x24   : > { %824 = vmatmul.mubr.msk.f32.gmra.mxu0 %vm255_vm0, %v237_v21  ;;  %851 = vmatprep.subr.mxu0 %v472_v22  ;;  %v1085_v21 = vld [vmem:[%s1149_s4] ss:$0 sm:$0xff] }
  0x25   : > { %826 = vmatprep.mubr.msk.f32.mxu0 %vm255_vm0, %v238_v23  ;;  %852 = vmatpush3.msra.mxu0 %v472_v22 }
  0x26   : > { %853 = vmatprep.subr.mxu0 %v471_v24  ;;  %898 = vmatprep.subr.mxu1 %v473_v20 }
  0x27   : > { %854 = vmatpush3.msra.mxu0 %v471_v24  ;;  %914 = vmatpush3.msra.mxu1 %v473_v20 }
  0x28   : > { %827 = vmatmul.mubr.msk.f32.gmra.mxu0 %vm255_vm0, %v239_v25  ;;  %855 = vmatprep.subr.mxu0 %v470_v26 }
  0x29   : > { %829 = vmatprep.mubr.msk.f32.mxu0 %vm255_vm0, %v240_v27  ;;  %856 = vmatpush3.msra.mxu0 %v470_v26 }
  0x2a   : > { %857 = vmatprep.subr.mxu0 %v469_v28  ;;  %899 = vmatprep.subr.mxu1 %v472_v22 }
  0x2b   : > { %858 = vmatpush3.msra.mxu0 %v469_v28  ;;  %915 = vmatpush3.msra.mxu1 %v472_v22 }
  0x2c   : > { %830 = vmatmul.mubr.msk.f32.gmra.mxu0 %vm255_vm0, %v241_v29  ;;  %900 = vmatprep.subr.mxu1 %v471_v24 }
  0x2d   : > { %832 = vmatprep.mubr.msk.f32.mxu0 %vm255_vm0, %v242_v30  ;;  %916 = vmatpush3.msra.mxu1 %v471_v24 }
  0x2e   : > { %901 = vmatprep.subr.mxu1 %v470_v26  ;;  %859 = vmatprep.subr.mxu0 %v468_v32 }
  0x2f   : > { %917 = vmatpush3.msra.mxu1 %v470_v26  ;;  %860 = vmatpush3.msra.mxu0 %v468_v32 }
  0x30   : > { %833 = vmatmul.mubr.msk.f32.gmra.mxu0 %vm255_vm0, %v243_v31  ;;  %902 = vmatprep.subr.mxu1 %v469_v28 }
  0x31   : > { %918 = vmatpush3.msra.mxu1 %v469_v28  ;;  %861 = vmatprep.subr.mxu0 %v467_v33 }
  0x32   : > { %903 = vmatprep.subr.mxu1 %v468_v32  ;;  %862 = vmatpush3.msra.mxu0 %v467_v33 }
  0x33   : > { %919 = vmatpush3.msra.mxu1 %v468_v32  ;;  %863 = vmatprep.subr.mxu0 %v466_v34 }
  0x34   : > { %904 = vmatprep.subr.mxu1 %v467_v33  ;;  %864 = vmatpush3.msra.mxu0 %v466_v34 }
  0x35   : > { %920 = vmatpush3.msra.mxu1 %v467_v33  ;;  %865 = vmatprep.subr.mxu0 %v465_v35 }
  0x36   : > { %905 = vmatprep.subr.mxu1 %v466_v34  ;;  %866 = vmatpush3.msra.mxu0 %v465_v35 }
  0x37   : > { %921 = vmatpush3.msra.mxu1 %v466_v34 }
  0x38   : > { %906 = vmatprep.subr.mxu1 %v465_v35 }
  0x39   : > { %922 = vmatpush3.msra.mxu1 %v465_v35 }
  0xd4   : > { %v813_v37 = vpop.f32.mrf.mxu0 }
  0xd5   : > { %v376_v38 = vadd.f32 %v813_v37, %v731_v36 }
  0xd6   : > { %v370_v39 = vpop.f32.mrf.mxu0 }
  0xd7   : > { %v371_v40 = vadd.f32 %v731_v36, %v370_v39  ;;  %v450_v43 = vmax.f32 %v376_v38, 0.0 }
  0xd8   : > { %v816_v41 = vpop.f32.mrf.mxu0 }
  0xd9   : > { %v449_v42 = vmax.f32 %v371_v40, 0.0  ;;  %v386_v44 = vadd.f32 %v816_v41, %v731_v36 }
  0xda   : > { %v380_v45 = vpop.f32.mrf.mxu0 }
  0xdb   : > { %v381_v46 = vadd.f32 %v731_v36, %v380_v45  ;;  %867 = vmatprep.mubr.f32.mxu0 %v449_v42  ;;  %v452_v49 = vmax.f32 %v386_v44, 0.0 }
  0xdc   : > { %v819_v47 = vpop.f32.mrf.mxu0  ;;  %868 = vmatmul.mubr.f32.vlgmr.msra.gmra.mxu0 %v450_v43 }
  0xdd   : > { %v451_v48 = vmax.f32 %v381_v46, 0.0  ;;  %v396_v50 = vadd.f32 %v819_v47, %v731_v36 }
  0xde   : > { %v390_v51 = vpop.f32.mrf.mxu0 }
  0xdf   : > { %v391_v52 = vadd.f32 %v731_v36, %v390_v51  ;;  %870 = vmatprep.mubr.f32.mxu0 %v451_v48  ;;  %v454_v55 = vmax.f32 %v396_v50, 0.0 }
  0xe0   : > { %v822_v53 = vpop.f32.mrf.mxu0  ;;  %871 = vmatmul.mubr.f32.gmra.mxu0 %v452_v49 }
  0xe1   : > { %v453_v54 = vmax.f32 %v391_v52, 0.0  ;;  %v406_v56 = vadd.f32 %v822_v53, %v731_v36 }
  0xe2   : > { %v400_v57 = vpop.f32.mrf.mxu0 }
  0xe3   : > { %873 = vmatprep.mubr.f32.mxu0 %v453_v54  ;;  %v401_v58 = vadd.f32 %v731_v36, %v400_v57  ;;  %v456_v61 = vmax.f32 %v406_v56, 0.0 }
  0xe4   : > { %v825_v59 = vpop.f32.mrf.mxu0  ;;  %874 = vmatmul.mubr.f32.gmra.mxu0 %v454_v55 }
  0xe5   : > { %v455_v60 = vmax.f32 %v401_v58, 0.0  ;;  %v416_v62 = vadd.f32 %v825_v59, %v731_v36 }
  0xe6   : > { %v410_v63 = vpop.f32.mrf.mxu0 }
  0xe7   : > { %v411_v0 = vadd.f32 %v731_v36, %v410_v63  ;;  %876 = vmatprep.mubr.f32.mxu1 %v455_v60  ;;  %v458_v3 = vmax.f32 %v416_v62, 0.0 }
  0xe8   : > { %v828_v1 = vpop.f32.mrf.mxu0  ;;  %877 = vmatmul.mubr.f32.vlgmr.msra.gmra.mxu1 %v456_v61 }
  0xe9   : > { %v457_v2 = vmax.f32 %v411_v0, 0.0  ;;  %v426_v4 = vadd.f32 %v828_v1, %v731_v36 }
  0xea   : > { %v420_v5 = vpop.f32.mrf.mxu0 }
  0xeb   : > { %v421_v6 = vadd.f32 %v731_v36, %v420_v5  ;;  %879 = vmatprep.mubr.f32.mxu1 %v457_v2  ;;  %v460_v9 = vmax.f32 %v426_v4, 0.0 }
  0xec   : > { %v831_v7 = vpop.f32.mrf.mxu0  ;;  %880 = vmatmul.mubr.f32.gmra.mxu1 %v458_v3 }
  0xed   : > { %v459_v8 = vmax.f32 %v421_v6, 0.0  ;;  %v436_v10 = vadd.f32 %v831_v7, %v731_v36 }
  0xee   : > { %v430_v11 = vpop.f32.mrf.mxu0 }
  0xef   : > { %v431_v12 = vadd.f32 %v731_v36, %v430_v11  ;;  %882 = vmatprep.mubr.f32.mxu1 %v459_v8  ;;  %v462_v15 = vmax.f32 %v436_v10, 0.0 }
  0xf0   : > { %v834_v13 = vpop.f32.mrf.mxu0  ;;  %883 = vmatmul.mubr.f32.gmra.mxu1 %v460_v9 }
  0xf1   : > { %v461_v14 = vmax.f32 %v431_v12, 0.0  ;;  %v446_v16 = vadd.f32 %v834_v13, %v731_v36 }
  0xf2   : > { %v440_v17 = vpop.f32.mrf.mxu0 }
  0xf3   : > { %v441_v18 = vadd.f32 %v731_v36, %v440_v17  ;;  %885 = vmatprep.mubr.f32.mxu1 %v461_v14  ;;  %v464_v20 = vmax.f32 %v446_v16, 0.0 }
  0xf4   : > { %886 = vmatmul.mubr.f32.gmra.mxu1 %v462_v15 }
  0xf5   : > { %v463_v19 = vmax.f32 %v441_v18, 0.0 }
  0xf7   : > { %888 = vmatprep.mubr.f32.mxu1 %v463_v19 }
  0xf8   : > { %889 = vmatmul.mubr.f32.gmra.mxu1 %v464_v20 }
 0x19c   : > { %v869_v22 = vpop.f32.mrf.mxu0 }
 0x19d   : > { %v560_v23 = vadd.f32 %v869_v22, %v1085_v21 }
 0x19e   : > { %v554_v24 = vpop.f32.mrf.mxu0 }
 0x19f   : > { %v634_v25 = vmax.f32 %v560_v23, 0.0  ;;  %v555_v26 = vadd.f32 %v1085_v21, %v554_v24 }
 0x1a0   : > { %v872_v27 = vpop.f32.mrf.mxu0 }
 0x1a1   : > { %651 = vst.msk [vmem:[%s1093_s26 + $0x8] sm:$0xff] %vm649_vm1, %v634_v25  ;;  %v633_v28 = vmax.f32 %v555_v26, 0.0  ;;  %v570_v29 = vadd.f32 %v872_v27, %v1085_v21 }
 0x1a2   : > { %v564_v30 = vpop.f32.mrf.mxu0 }
 0x1a3   : > { %650 = vst.msk [vmem:[%s1093_s26] sm:$0xff] %vm649_vm1, %v633_v28  ;;  %v636_v31 = vmax.f32 %v570_v29, 0.0  ;;  %v565_v32 = vadd.f32 %v1085_v21, %v564_v30 }
 0x1a4   : > { %v875_v33 = vpop.f32.mrf.mxu0 }
 0x1a5   : > { %653 = vst.msk [vmem:[%s1093_s26 + $0x18] sm:$0xff] %vm649_vm1, %v636_v31  ;;  %v635_v34 = vmax.f32 %v565_v32, 0.0  ;;  %v580_v35 = vadd.f32 %v875_v33, %v1085_v21 }
 0x1a6   : > { %v574_v36 = vpop.f32.mrf.mxu0 }
 0x1a7   : > { %652 = vst.msk [vmem:[%s1093_s26 + $0x10] sm:$0xff] %vm649_vm1, %v635_v34  ;;  %v638_v37 = vmax.f32 %v580_v35, 0.0  ;;  %v575_v38 = vadd.f32 %v1085_v21, %v574_v36 }
 0x1a8   : > { %v878_v39 = vpop.f32.mrf.mxu1 }
 0x1a9   : > { %655 = vst.msk [vmem:[%s1093_s26 + $0x28] sm:$0xff] %vm649_vm1, %v638_v37  ;;  %v637_v40 = vmax.f32 %v575_v38, 0.0  ;;  %v590_v41 = vadd.f32 %v878_v39, %v1085_v21 }
 0x1aa   : > { %v584_v42 = vpop.f32.mrf.mxu1 }
 0x1ab   : > { %654 = vst.msk [vmem:[%s1093_s26 + $0x20] sm:$0xff] %vm649_vm1, %v637_v40  ;;  %v640_v43 = vmax.f32 %v590_v41, 0.0  ;;  %v585_v44 = vadd.f32 %v1085_v21, %v584_v42 }
 0x1ac   : > { %v881_v45 = vpop.f32.mrf.mxu1 }
 0x1ad   : > { %657 = vst.msk [vmem:[%s1093_s26 + $0x38] sm:$0xff] %vm649_vm1, %v640_v43  ;;  %v639_v46 = vmax.f32 %v585_v44, 0.0  ;;  %v600_v47 = vadd.f32 %v881_v45, %v1085_v21 }
 0x1ae   : > { %v594_v48 = vpop.f32.mrf.mxu1 }
 0x1af   : > { %656 = vst.msk [vmem:[%s1093_s26 + $0x30] sm:$0xff] %vm649_vm1, %v639_v46  ;;  %v642_v49 = vmax.f32 %v600_v47, 0.0  ;;  %v595_v50 = vadd.f32 %v1085_v21, %v594_v48 }
 0x1b0   : > { %v884_v51 = vpop.f32.mrf.mxu1 }
 0x1b1   : > { %659 = vst.msk [vmem:[%s1093_s26 + $0x48] sm:$0xff] %vm649_vm1, %v642_v49  ;;  %v641_v52 = vmax.f32 %v595_v50, 0.0  ;;  %v610_v53 = vadd.f32 %v884_v51, %v1085_v21 }
 0x1b2   : > { %v604_v54 = vpop.f32.mrf.mxu1 }
 0x1b3   : > { %658 = vst.msk [vmem:[%s1093_s26 + $0x40] sm:$0xff] %vm649_vm1, %v641_v52  ;;  %v644_v55 = vmax.f32 %v610_v53, 0.0  ;;  %v605_v56 = vadd.f32 %v1085_v21, %v604_v54 }
 0x1b4   : > { %v887_v57 = vpop.f32.mrf.mxu1 }
 0x1b5   : > { %661 = vst.msk [vmem:[%s1093_s26 + $0x58] sm:$0xff] %vm649_vm1, %v644_v55  ;;  %v643_v58 = vmax.f32 %v605_v56, 0.0  ;;  %v620_v59 = vadd.f32 %v887_v57, %v1085_v21 }
 0x1b6   : > { %v614_v60 = vpop.f32.mrf.mxu1 }
 0x1b7   : > { %660 = vst.msk [vmem:[%s1093_s26 + $0x50] sm:$0xff] %vm649_vm1, %v643_v58  ;;  %v646_v61 = vmax.f32 %v620_v59, 0.0  ;;  %v615_v62 = vadd.f32 %v1085_v21, %v614_v60 }
 0x1b8   : > { %v890_v63 = vpop.f32.mrf.mxu1 }
 0x1b9   : > { %663 = vst.msk [vmem:[%s1093_s26 + $0x68] sm:$0xff] %vm649_vm1, %v646_v61  ;;  %v645_v0 = vmax.f32 %v615_v62, 0.0  ;;  %v630_v1 = vadd.f32 %v890_v63, %v1085_v21 }
 0x1ba   : > { %v624_v2 = vpop.f32.mrf.mxu1 }
 0x1bb   : > { %662 = vst.msk [vmem:[%s1093_s26 + $0x60] sm:$0xff] %vm649_vm1, %v645_v0  ;;  %v648_v3 = vmax.f32 %v630_v1, 0.0  ;;  %v625_v4 = vadd.f32 %v1085_v21, %v624_v2 }
 0x1bd   : > { %665 = vst.msk [vmem:[%s1093_s26 + $0x78] sm:$0xff] %vm649_vm1, %v648_v3  ;;  %v647_v5 = vmax.f32 %v625_v4, 0.0 }
 0x1bf   : > { %664 = vst.msk [vmem:[%s1093_s26 + $0x70] sm:$0xff] %vm649_vm1, %v647_v5 }
 0x1c0 PF: > { %s15_s18 = sadd.s32 1, %s937_s18  }
 0x1c1   : > { %p12_p4 = scmp.ge.s32.totalorder %s15_s18, 4  }
 0x1c3   :  { %14 = sbr.rel (!%p12_p4) target bundleno = 1 (0x1), region = 70 }

</bundles_post_ra>
